<compile_context>
chip_gen: v7x
topology: tpu7x:2x2x1
jax: 0.10.0
libtpu: 0.0.40
codegen_flags: <defaults>
</compile_context>

<pallas_src>
import functools

import jax
import jax.numpy as jnp
from jax.experimental import pallas as pl
from jax.experimental.pallas import tpu as pltpu


def _label_smoothing_kernel(pred_ref, tgt_ref, out_ref, *, smoothing, num_classes, block_rows):
    i = pl.program_id(0)
    row0 = pl.multiple_of(i * block_rows, block_rows)

    x = pred_ref[...].astype(jnp.float32)                 # (TB, C)
    tgt = tgt_ref[pl.ds(row0, block_rows), :]             # (TB, 1) int32, sliced from resident copy

    # Numerically-safe logsumexp along the class (lane) axis.
    m = jnp.max(x, axis=-1, keepdims=True)                # (TB, 1)
    lse = m + jnp.log(jnp.sum(jnp.exp(x - m), axis=-1, keepdims=True))  # (TB, 1)

    # Pieces needed for the smoothed cross entropy (no logp / true_dist temporaries).
    row_sum = jnp.sum(x, axis=-1, keepdims=True)          # (TB, 1) = sum_c x
    class_ids = jax.lax.broadcasted_iota(jnp.int32, x.shape, dimension=1)
    x_tgt = jnp.sum(jnp.where(class_ids == tgt, x, 0.0), axis=-1, keepdims=True)  # (TB, 1) = x[tgt]

    off = smoothing / (num_classes - 1)
    on = 1.0 - smoothing
    # sum_c -true_dist[c] * (x[c] - lse)
    #   = off * (C*lse - sum_c x) + (on - off) * (lse - x[tgt])
    out_ref[...] = off * (jnp.float32(num_classes) * lse - row_sum) + (on - off) * (lse - x_tgt)


def _pick_block_rows(n, c, *, per_buffer_bytes=12 * 1024 * 1024, max_rows=2048):
    """Largest row tile s.t. one f32 pred buffer (lane-padded) fits the per-buffer budget."""
    c_pad = ((c + 127) // 128) * 128
    rows = per_buffer_bytes // (c_pad * 4)
    rows = min(rows, max_rows, n)
    rows = max(rows, 8)
    if rows >= n:
        return n
    if n % 8 != 0:
        # TODO(synk): ragged n — pad rows or mask the last block instead of one big block.
        return n
    rows = (rows // 8) * 8
    while n % rows != 0:
        rows -= 8
    return rows


def label_smoothing_loss(pred, target, *, num_classes, smoothing=0.1, block_rows=None):
    assert 0 <= smoothing < 1
    n, c = pred.shape
    assert c == num_classes
    # TODO(synk): for vocab-scale C (block won't fit VMEM even at 8 rows), add a class-axis
    # grid dimension with an online max/logsumexp accumulator; full-C rows assumed here.
    if block_rows is None:
        block_rows = _pick_block_rows(n, c)
    assert n % block_rows == 0, (n, block_rows)
    tgt2d = target.astype(jnp.int32).reshape(n, 1)

    kernel = functools.partial(
        _label_smoothing_kernel,
        smoothing=float(smoothing),
        num_classes=int(num_classes),
        block_rows=int(block_rows),
    )

    per_row = pl.pallas_call(
        kernel,
        out_shape=jax.ShapeDtypeStruct((n, 1), jnp.float32),
        grid_spec=pltpu.PrefetchScalarGridSpec(
            num_scalar_prefetch=0,
            grid=(n // block_rows,),
            in_specs=[
                pl.BlockSpec((block_rows, c), lambda i: (i, 0)),   # streamed pred tile
                pl.BlockSpec((n, 1), lambda i: (0, 0)),            # resident target (DMA'd once)
            ],
            out_specs=pl.BlockSpec((block_rows, 1), lambda i: (i, 0)),
        ),
        compiler_params=pltpu.CompilerParams(
            dimension_semantics=("parallel",),       # disjoint outputs -> megacore-shardable
            vmem_limit_bytes=40 * 1024 * 1024,       # covers 2x12MiB pred + out + resident tgt
        ),
    )(pred, tgt2d)
    # Final mean over per-row losses (tiny) is done outside the kernel.
    return jnp.mean(per_row)


def _reference(pred, target, num_classes, smoothing):
    logp = jax.nn.log_softmax(pred.astype(jnp.float32), axis=-1)
    true_dist = jnp.full_like(logp, smoothing / (num_classes - 1))
    true_dist = true_dist.at[jnp.arange(pred.shape[0]), target].set(1.0 - smoothing)
    return jnp.mean(jnp.sum(-true_dist * logp, axis=-1))


if __name__ == "__main__":
    key = jax.random.PRNGKey(0)
    k1, k2 = jax.random.split(key)

    N, C = 256, 128
    smoothing = 0.1

    pred = jax.random.normal(k1, (N, C), dtype=jnp.float32)
    target = jax.random.randint(k2, (N,), 0, C, dtype=jnp.int32)

    ref = _reference(pred, target, C, smoothing)

    # Multi-block grid (exercises the parallel tiling + dynamic target slice).
    loss = label_smoothing_loss(pred, target, num_classes=C, smoothing=smoothing, block_rows=64)
    loss = jax.block_until_ready(loss)
    assert jnp.allclose(loss, ref, atol=1e-4, rtol=1e-4), (loss, ref)

    # Auto-sized tile (single large block for this small problem).
    loss2 = label_smoothing_loss(pred, target, num_classes=C, smoothing=smoothing)
    loss2 = jax.block_until_ready(loss2)
    assert jnp.allclose(loss2, ref, atol=1e-4, rtol=1e-4), (loss2, ref)

    print("KERNEL_OK")
</pallas_src>

<mosaic_0001>
module attributes {stable_mosaic.version = 11 : i64} {
  func.func @_label_smoothing_kernel(%arg0: i32, %arg1: memref<64x128xf32, #tpu.memory_space<vmem>>, %arg2: memref<256x1xi32, #tpu.memory_space<vmem>>, %arg3: memref<64x1xf32, #tpu.memory_space<vmem>>) attributes {dimension_semantics = [#tpu.dimension_semantics<parallel>], iteration_bounds = array<i64: 4>, scalar_prefetch = 0 : i64, scratch_operands = 0 : i64, tpu.core_type = #tpu.core_type<tc>, window_params = [{transform_indices = @transform_0, window_bounds = array<i64: 64, 128>}, {pipeline_mode = #tpu.pipeline_mode<synchronous>, transform_indices = @transform_1, window_bounds = array<i64: 256, 1>}, {transform_indices = @transform_2, window_bounds = array<i64: 64, 1>}]} {
    %c64_i32 = arith.constant 64 : i32
    %0 = arith.muli %arg0, %c64_i32 : i32
    %1 = tpu.assume_multiple %0, 64 : i32
    %c0 = arith.constant 0 : index
    %c0_0 = arith.constant 0 : index
    %2 = vector.load %arg1[%c0, %c0_0] : memref<64x128xf32, #tpu.memory_space<vmem>>, vector<64x128xf32>
    %3 = arith.index_cast %1 : i32 to index
    %c0_1 = arith.constant 0 : index
    %4 = vector.load %arg2[%3, %c0_1] : memref<256x1xi32, #tpu.memory_space<vmem>>, vector<64x1xi32>
    %cst = arith.constant dense<0xFF800000> : vector<64xf32>
    %5 = vector.multi_reduction <maximumf>, %2, %cst [1] : vector<64x128xf32> to vector<64xf32>
    %6 = vector.shape_cast %5 : vector<64xf32> to vector<64x1xf32>
    %7 = vector.broadcast %6 : vector<64x1xf32> to vector<64x128xf32>
    %8 = arith.subf %2, %7 : vector<64x128xf32>
    %9 = math.exp %8 : vector<64x128xf32>
    %cst_2 = arith.constant dense<0.000000e+00> : vector<64xf32>
    %10 = vector.multi_reduction <add>, %9, %cst_2 [1] : vector<64x128xf32> to vector<64xf32>
    %11 = vector.shape_cast %10 : vector<64xf32> to vector<64x1xf32>
    %12 = math.log %11 : vector<64x1xf32>
    %13 = arith.addf %6, %12 : vector<64x1xf32>
    %cst_3 = arith.constant dense<0.000000e+00> : vector<64xf32>
    %14 = vector.multi_reduction <add>, %2, %cst_3 [1] : vector<64x128xf32> to vector<64xf32>
    %15 = vector.shape_cast %14 : vector<64xf32> to vector<64x1xf32>
    %16 = tpu.iota {dimensions = array<i32: 1>} : vector<64x128xi32>
    %17 = vector.broadcast %4 : vector<64x1xi32> to vector<64x128xi32>
    %18 = arith.cmpi eq, %16, %17 : vector<64x128xi32>
    %cst_4 = arith.constant 0.000000e+00 : f32
    %19 = vector.broadcast %cst_4 : f32 to vector<64x128xf32>
    %20 = arith.select %18, %2, %19 : vector<64x128xi1>, vector<64x128xf32>
    %cst_5 = arith.constant dense<0.000000e+00> : vector<64xf32>
    %21 = vector.multi_reduction <add>, %20, %cst_5 [1] : vector<64x128xf32> to vector<64xf32>
    %22 = vector.shape_cast %21 : vector<64xf32> to vector<64x1xf32>
    %cst_6 = arith.constant 1.280000e+02 : f32
    %23 = vector.broadcast %cst_6 : f32 to vector<64x1xf32>
    %24 = arith.mulf %23, %13 : vector<64x1xf32>
    %25 = arith.subf %24, %15 : vector<64x1xf32>
    %cst_7 = arith.constant 7.87401571E-4 : f32
    %26 = vector.broadcast %cst_7 : f32 to vector<64x1xf32>
    %27 = arith.mulf %26, %25 : vector<64x1xf32>
    %28 = arith.subf %13, %22 : vector<64x1xf32>
    %cst_8 = arith.constant 0.899212599 : f32
    %29 = vector.broadcast %cst_8 : f32 to vector<64x1xf32>
    %30 = arith.mulf %29, %28 : vector<64x1xf32>
    %31 = arith.addf %27, %30 : vector<64x1xf32>
    %c0_9 = arith.constant 0 : index
    %c0_10 = arith.constant 0 : index
    %32 = vector.load %arg3[%c0_9, %c0_10] : memref<64x1xf32, #tpu.memory_space<vmem>>, vector<64x1xf32>
    tpu.vector_store %arg3[%c0_9, %c0_10], %31 {strides = array<i32>} : memref<64x1xf32, #tpu.memory_space<vmem>>, vector<64x1xf32>,
    return
  }
  func.func @transform_0(%arg0: i32) -> (i32, i32) {
    %c0_i32 = arith.constant 0 : i32
    %c0_i32_0 = arith.constant 0 : i32
    return %arg0, %c0_i32 : i32, i32
  }
  func.func @transform_1(%arg0: i32) -> (i32, i32) {
    %c0_i32 = arith.constant 0 : i32
    %c0_i32_0 = arith.constant 0 : i32
    %c0_i32_1 = arith.constant 0 : i32
    return %c0_i32, %c0_i32_0 : i32, i32
  }
  func.func @transform_2(%arg0: i32) -> (i32, i32) {
    %c0_i32 = arith.constant 0 : i32
    %c0_i32_0 = arith.constant 0 : i32
    return %arg0, %c0_i32 : i32, i32
  }
}

</mosaic_0001>

<bundles_post_ra>
// kernel: tpu_custom_call.1
= control target key start
LH: loop header
LB: loop body
LE: loop exit
PB: predicated region body
PF: predicated region fallthrough
CT: control target
= control target key end

     0   :  { %s513_s9 = smov 0   ;;  %s653_s0 = inlined_call_operand.vmem [shape: f32[256,128], index: 0, kind: input, shape index: {}]   ;;  %s654_s1 = inlined_call_operand.vmem [shape: s32[256,1], index: 1, kind: input, shape index: {}]   ;;  %s655_s2 = inlined_call_operand.vmem [shape: f32[256,1], index: 2, kind: output, shape index: {}]  }
   0x1 LB: > { %s434_s10 = sadd.s32 4294967295, %s495_s9   ;;  %p438_p0 = scmp.ge.s32.totalorder %s495_s9, 1  ;;  %s495_s9 = sphi %s513_s9, %s12_s9  }
   0x2   : > { %p113_p1 = scmp.lt.s32.totalorder %s495_s9, 5 }
   0x4   : > { %p114_p2 = pnand %p438_p0, %p113_p1 }
   0x5   : > { %s439_s11 = sshll.u32 (!%p114_p2), %s434_s10, 3  ;;  %v497_v0 = vmov (!%p114_p2), 0   ;;  %s443_s16 = sshll.u32 (!%p114_p2), %s434_s10, 6  ;;  %v261_v49 = vlaneseq (!%p114_p2)  ;;  %vm367_vm8 = vcmask (!%p114_p2), 7168  }
   0x6   : > { %117 = sbr.rel (%p114_p2) target bundleno = 360 (0x168), region = 28  ;;  %p136_p3 = scmp.lt.s32.totalorder (!%p114_p2), %s439_s11, 31  ;;  %456 = vset.pattern.permute.xlu1 (!%p114_p2), %v497_v0  ;;  %455 = vset.pattern.permute.xlu0 (!%p114_p2), %v497_v0 }
   0x7   : > { %s156_s19 = scalar_lea.vmem (!%p114_p2), %s654_s1, %s443_s16  ;;  %v262_v53 = vand.u32 (!%p114_p2), 127, %v261_v49 }
   0x8   : > { %v158_v9 = vld [vmem:[%s156_s19 + $0x8] sm:$0xff] (!%p114_p2)  ;;  %v159_v10 = vld [vmem:[%s156_s19 + $0x10] sm:$0xff] (!%p114_p2)  ;;  %v157_v11 = vld [vmem:[%s156_s19] sm:$0xff] (!%p114_p2) }
   0x9   : > { %v160_v12 = vld [vmem:[%s156_s19 + $0x18] sm:$0xff] (!%p114_p2)  ;;  %v161_v13 = vld [vmem:[%s156_s19 + $0x20] sm:$0xff] (!%p114_p2)  ;;  %v162_v14 = vld [vmem:[%s156_s19 + $0x28] sm:$0xff] (!%p114_p2) }
   0xa   : > { %v163_v15 = vld [vmem:[%s156_s19 + $0x30] sm:$0xff] (!%p114_p2)  ;;  %v164_v16 = vld [vmem:[%s156_s19 + $0x38] sm:$0xff] (!%p114_p2) }
   0xd   : > { %s657_s11 = smov (!%p136_p3, %s439_s11), 31 }
   0xe   : > { %s440_s12 = sshll.u32 %s657_s11, 3 }
   0xf   : > { %s139_s15 = scalar_lea.vmem %s653_s0, %s440_s12  ;;  %s624_s22 = scalar_lea.vmem %s655_s2, %s440_s12 }
  0x10   : > { %v529_v1 = vld [vmem:[%s139_s15 + $0x10] sm:$0xff]  ;;  %v531_v2 = vld [vmem:[%s139_s15] sm:$0xff]  ;;  %v535_v3 = vld [vmem:[%s139_s15 + $0x18] sm:$0xff] }
  0x11   : > { %169 = vmax.xlane.f32.xlu1 %v529_v1  ;;  %165 = vmax.xlane.f32.xlu0 %v531_v2  ;;  %v537_v4 = vld [vmem:[%s139_s15 + $0x8] sm:$0xff]  ;;  %v543_v6 = vld [vmem:[%s139_s15 + $0x20] sm:$0xff]  ;;  %v547_v7 = vld [vmem:[%s139_s15 + $0x38] sm:$0xff] }
  0x12   : > { %v541_v5 = vld [vmem:[%s139_s15 + $0x28] sm:$0xff]  ;;  %v549_v8 = vld [vmem:[%s139_s15 + $0x30] sm:$0xff] }
  0x15   : > { %171 = vmax.xlane.f32.xlu1 %v535_v3  ;;  %167 = vmax.xlane.f32.xlu0 %v537_v4 }
  0x19   : > { %175 = vmax.xlane.f32.xlu1 %v541_v5  ;;  %173 = vmax.xlane.f32.xlu0 %v543_v6 }
  0x1d   : > { %179 = vmax.xlane.f32.xlu1 %v547_v7  ;;  %177 = vmax.xlane.f32.xlu0 %v549_v8 }
  0x2e   : > { %267 = vperm.xlu1 %456, %v158_v9  }
  0x32   : > { %270 = vperm.xlu1 %456, %v159_v10  }
  0x33   : > { %264 = vperm.xlu0 %455, %v157_v11  }
  0x36   : > { %273 = vperm.xlu1 %456, %v160_v12  }
  0x3a   : > { %276 = vperm.xlu1 %456, %v161_v13  }
  0x3e   : > { %279 = vperm.xlu1 %456, %v162_v14  }
  0x42   : > { %282 = vperm.xlu1 %456, %v163_v15  }
  0x46   : > { %285 = vperm.xlu1 %456, %v164_v16  }
  0x52   : > { %245 = vadd.xlane.f32.xlu0 %v531_v2 }
  0x56   : > { %249 = vadd.xlane.f32.xlu0 %v529_v1 }
  0x5a   : > { %253 = vadd.xlane.f32.xlu0 %v543_v6 }
  0x6a   : > { %247 = vadd.xlane.f32.xlu1 %v537_v4 }
  0x6e   : > { %251 = vadd.xlane.f32.xlu1 %v535_v3 }
  0x72   : > { %255 = vadd.xlane.f32.xlu1 %v541_v5 }
  0x9e   : > { %v562_v17 = vpop.xlane.xlu1 %169  ;;  %v564_v18 = vpop.xlane.xlu0 %165 }
  0x9f   : > { %v181_v19 = vsub.f32 %v531_v2, %v564_v18  ;;  %v183_v25 = vsub.f32 %v529_v1, %v562_v17 }
  0xa1   : > { %v189_v20 = vmul.f32 1.442695, %v181_v19  ;;  %v193_v32 = vmul.f32 1.442695, %v183_v25 }
  0xa2   : > { %v568_v21 = vpop.xlane.xlu1 %171  ;;  %v570_v22 = vpop.xlane.xlu0 %167 }
  0xa3   : > { %v184_v23 = vsub.f32 %v535_v3, %v568_v21  ;;  %v182_v24 = vsub.f32 %v537_v4, %v570_v22  ;;  %457 = vpow2.f32 %v189_v20 }
  0xa5   : > { %v195_v26 = vmul.f32 1.442695, %v184_v23  ;;  %v191_v27 = vmul.f32 1.442695, %v182_v24 }
  0xa6   : > { %v578_v28 = vpop.xlane.xlu1 %175  ;;  %v580_v29 = vpop.xlane.xlu0 %173 }
  0xa7   : > { %459 = vpow2.f32 %v195_v26  ;;  %v186_v30 = vsub.f32 %v541_v5, %v578_v28  ;;  %v185_v31 = vsub.f32 %v543_v6, %v580_v29 }
  0xa8   : > { %461 = vpow2.f32 %v191_v27 }
  0xa9   : > { %v199_v33 = vmul.f32 1.442695, %v186_v30  ;;  %v197_v35 = vmul.f32 1.442695, %v185_v31 }
  0xaa   : > { %v586_v34 = vpop.xlane.xlu1 %179  ;;  %v588_v36 = vpop.xlane.xlu0 %177 }
  0xab   : > { %463 = vpow2.f32 %v199_v33  ;;  %v188_v37 = vsub.f32 %v547_v7, %v586_v34  ;;  %v187_v38 = vsub.f32 %v549_v8, %v588_v36 }
  0xac   : > { %465 = vpow2.f32 %v193_v32 }
  0xad   : > { %v203_v39 = vmul.f32 1.442695, %v188_v37  ;;  %v458_v40 = vpop.eup %457  ;;  %467 = vpow2.f32 %v197_v35  ;;  %v201_v42 = vmul.f32 1.442695, %v187_v38 }
  0xae   : > { %v268_v41 = vpop.permute.xlu1 %267  ;;  %205 = vadd.xlane.f32.xlu1 %v458_v40 }
  0xaf   : > { %469 = vpow2.f32 %v203_v39  ;;  %vm288_vm0 = vcmp.eq.s32.totalorder %v262_v53, %v268_v41 }
  0xb0   : > { %471 = vpow2.f32 %v201_v42  ;;  %v296_v58 = vsel %vm288_vm0, %v537_v4, 0.0 }
  0xb1   : > { %v460_v43 = vpop.eup %459 }
  0xb2   : > { %v462_v44 = vpop.eup %461  ;;  %v271_v45 = vpop.permute.xlu1 %270  ;;  %211 = vadd.xlane.f32.xlu1 %v460_v43 }
  0xb3   : > { %207 = vadd.xlane.f32.xlu0 %v462_v44  ;;  %v265_v56 = vpop.permute.xlu0 %264  ;;  %vm289_vm3 = vcmp.eq.s32.totalorder %v262_v53, %v271_v45 }
  0xb4   : > { %vm287_vm1 = vcmp.eq.s32.totalorder %v262_v53, %v265_v56  ;;  %v297_v63 = vsel %vm289_vm3, %v529_v1, 0.0 }
  0xb5   : > { %v464_v46 = vpop.eup %463  ;;  %v295_v59 = vsel %vm287_vm1, %v531_v2, 0.0 }
  0xb6   : > { %v466_v47 = vpop.eup %465  ;;  %v274_v48 = vpop.permute.xlu1 %273  ;;  %215 = vadd.xlane.f32.xlu1 %v464_v46 }
  0xb7   : > { %209 = vadd.xlane.f32.xlu0 %v466_v47  ;;  %v468_v50 = vpop.eup %467  ;;  %vm290_vm2 = vcmp.eq.s32.totalorder %v262_v53, %v274_v48 }
  0xb8   : > { %v298_v60 = vsel %vm290_vm2, %v535_v3, 0.0 }
  0xb9   : > { %v470_v51 = vpop.eup %469 }
  0xba   : > { %v277_v52 = vpop.permute.xlu1 %276  ;;  %219 = vadd.xlane.f32.xlu1 %v470_v51  ;;  %v472_v54 = vpop.eup %471 }
  0xbb   : > { %213 = vadd.xlane.f32.xlu0 %v468_v50  ;;  %vm291_vm5 = vcmp.eq.s32.totalorder %v262_v53, %v277_v52 }
  0xbc   : > { %v299_v4 = vsel %vm291_vm5, %v543_v6, 0.0 }
  0xbe   : > { %v280_v55 = vpop.permute.xlu1 %279  ;;  %259 = vadd.xlane.f32.xlu1 %v547_v7 }
  0xbf   : > { %217 = vadd.xlane.f32.xlu0 %v472_v54  ;;  %vm292_vm4 = vcmp.eq.s32.totalorder %v262_v53, %v280_v55 }
  0xc0   : > { %v300_v62 = vsel %vm292_vm4, %v541_v5, 0.0 }
  0xc2   : > { %v283_v57 = vpop.permute.xlu1 %282  ;;  %305 = vadd.xlane.f32.xlu1 %v296_v58 }
  0xc3   : > { %257 = vadd.xlane.f32.xlu0 %v549_v8  ;;  %vm293_vm7 = vcmp.eq.s32.totalorder %v262_v53, %v283_v57 }
  0xc4   : > { %v301_v2 = vsel %vm293_vm7, %v549_v8, 0.0 }
  0xc6   : > { %309 = vadd.xlane.f32.xlu1 %v298_v60  ;;  %v286_v61 = vpop.permute.xlu1 %285 }
  0xc7   : > { %303 = vadd.xlane.f32.xlu0 %v295_v59  ;;  %vm294_vm6 = vcmp.eq.s32.totalorder %v262_v53, %v286_v61 }
  0xc8   : > { %v302_v0 = vsel %vm294_vm6, %v547_v7, 0.0 }
  0xca   : > { %313 = vadd.xlane.f32.xlu1 %v300_v62 }
  0xcb   : > { %307 = vadd.xlane.f32.xlu0 %v297_v63 }
  0xce   : > { %317 = vadd.xlane.f32.xlu1 %v302_v0 }
  0xcf   : > { %311 = vadd.xlane.f32.xlu0 %v299_v4 }
  0xd3   : > { %315 = vadd.xlane.f32.xlu0 %v301_v2 }
  0xdf   : > { %v246_v9 = vpop.xlane.xlu0 %245 }
  0xe3   : > { %v604_v5 = vpop.xlane.xlu0 %249 }
  0xe7   : > { %v608_v11 = vpop.xlane.xlu0 %253 }
  0xf7   : > { %v248_v3 = vpop.xlane.xlu1 %247 }
  0xfb   : > { %v252_v10 = vpop.xlane.xlu1 %251 }
  0xff   : > { %v606_v1 = vpop.xlane.xlu1 %255 }
 0x13b   : > { %v206_v12 = vpop.xlane.xlu1 %205 }
 0x13c   : > { %473 = vlog2.f32 %v206_v12 }
 0x13f   : > { %v212_v7 = vpop.xlane.xlu1 %211 }
 0x140   : > { %v208_v13 = vpop.xlane.xlu0 %207  ;;  %475 = vlog2.f32 %v212_v7 }
 0x141   : > { %477 = vlog2.f32 %v208_v13 }
 0x143   : > { %v216_v6 = vpop.xlane.xlu1 %215 }
 0x144   : > { %v210_v14 = vpop.xlane.xlu0 %209  ;;  %479 = vlog2.f32 %v216_v6 }
 0x145   : > { %481 = vlog2.f32 %v210_v14 }
 0x146   : > { %v474_v8 = vpop.eup %473 }
 0x147   : > { %v222_v15 = vmul.f32 0.6931472, %v474_v8  ;;  %v220_v16 = vpop.xlane.xlu1 %219 }
 0x148   : > { %v214_v19 = vpop.xlane.xlu0 %213  ;;  %483 = vlog2.f32 %v220_v16 }
 0x149   : > { %485 = vlog2.f32 %v214_v19  ;;  %v237_v20 = vadd.f32 %v222_v15, %v564_v18 }
 0x14a   : > { %v476_v23 = vpop.eup %475 }
 0x14b   : > { %v478_v24 = vpop.eup %477  ;;  %v228_v25 = vmul.f32 0.6931472, %v476_v23  ;;  %v611_v26 = vpop.xlane.xlu1 %259  ;;  %v319_v30 = vmul.f32 128.0, %v237_v20 }
 0x14c   : > { %v218_v27 = vpop.xlane.xlu0 %217  ;;  %v224_v31 = vmul.f32 0.6931472, %v478_v24 }
 0x14d   : > { %487 = vlog2.f32 %v218_v27  ;;  %v240_v32 = vadd.f32 %v228_v25, %v568_v21  ;;  %v327_v41 = vsub.f32 %v319_v30, %v246_v9 }
 0x14e   : > { %v480_v33 = vpop.eup %479  ;;  %v238_v35 = vadd.f32 %v224_v31, %v570_v22 }
 0x14f   : > { %v482_v37 = vpop.eup %481  ;;  %v232_v38 = vmul.f32 0.6931472, %v480_v33  ;;  %v306_v39 = vpop.xlane.xlu1 %305  ;;  %v322_v18 = vmul.f32 128.0, %v240_v32  ;;  %v335_v52 = vmul.f32 0.0007874016, %v327_v41 }
 0x150   : > { %v615_v40 = vpop.xlane.xlu0 %257  ;;  %v226_v42 = vmul.f32 0.6931472, %v482_v37  ;;  %v320_v43 = vmul.f32 128.0, %v238_v35  ;;  %v344_v44 = vsub.f32 %v238_v35, %v306_v39 }
 0x151   : > { %v330_v45 = vsub.f32 %v322_v18, %v252_v10  ;;  %v242_v46 = vadd.f32 %v232_v38, %v578_v28 }
 0x152   : > { %v484_v47 = vpop.eup %483  ;;  %v328_v48 = vsub.f32 %v320_v43, %v248_v3  ;;  %v352_v21 = vmul.f32 0.8992126, %v344_v44  ;;  %v239_v49 = vadd.f32 %v226_v42, %v562_v17 }
 0x153   : > { %v486_v22 = vpop.eup %485  ;;  %v236_v50 = vmul.f32 0.6931472, %v484_v47  ;;  %v310_v51 = vpop.xlane.xlu1 %309  ;;  %v324_v54 = vmul.f32 128.0, %v242_v46  ;;  %v338_v28 = vmul.f32 0.0007874016, %v330_v45 }
 0x154   : > { %v304_v53 = vpop.xlane.xlu0 %303  ;;  %v230_v55 = vmul.f32 0.6931472, %v486_v22  ;;  %v336_v56 = vmul.f32 0.0007874016, %v328_v48  ;;  %v346_v57 = vsub.f32 %v240_v32, %v310_v51  ;;  %v321_v60 = vmul.f32 128.0, %v239_v49 }
 0x155   : > { %v343_v58 = vsub.f32 %v237_v20, %v304_v53  ;;  %v244_v17 = vadd.f32 %v236_v50, %v586_v34  ;;  %v332_v59 = vsub.f32 %v324_v54, %v606_v1 }
 0x156   : > { %v360_v62 = vadd.f32 %v352_v21, %v336_v56  ;;  %v354_v63 = vmul.f32 0.8992126, %v346_v57  ;;  %v241_v4 = vadd.f32 %v230_v55, %v580_v29  ;;  %v329_v10 = vsub.f32 %v321_v60, %v604_v5 }
 0x157   : > { %v488_v61 = vpop.eup %487  ;;  %v351_v0 = vmul.f32 0.8992126, %v343_v58  ;;  %v326_v2 = vmul.f32 128.0, %v244_v17  ;;  %v314_v9 = vpop.xlane.xlu1 %313  ;;  %v340_v8 = vmul.f32 0.0007874016, %v332_v59 }
 0x158   : > { %v234_v3 = vmul.f32 0.6931472, %v488_v61  ;;  %v308_v12 = vpop.xlane.xlu0 %307  ;;  %369 = vst.msk [vmem:[%s624_s22 + $0x8] sm:$0xff] %vm367_vm8, %v360_v62  ;;  %v362_v34 = vadd.f32 %v354_v63, %v338_v28  ;;  %v348_v1 = vsub.f32 %v242_v46, %v314_v9  ;;  %v323_v15 = vmul.f32 128.0, %v241_v4 }
 0x159   : > { %v359_v7 = vadd.f32 %v351_v0, %v335_v52  ;;  %v345_v13 = vsub.f32 %v239_v49, %v308_v12  ;;  %v334_v6 = vsub.f32 %v326_v2, %v611_v26  ;;  %v337_v5 = vmul.f32 0.0007874016, %v329_v10 }
 0x15a   : > { %v243_v14 = vadd.f32 %v234_v3, %v588_v36  ;;  %371 = vst.msk [vmem:[%s624_s22 + $0x18] sm:$0xff] %vm367_vm8, %v362_v34  ;;  %v356_v29 = vmul.f32 0.8992126, %v348_v1  ;;  %v331_v23 = vsub.f32 %v323_v15, %v608_v11 }
 0x15b   : > { %368 = vst.msk [vmem:[%s624_s22] sm:$0xff] %vm367_vm8, %v359_v7  ;;  %v353_v16 = vmul.f32 0.8992126, %v345_v13  ;;  %v318_v20 = vpop.xlane.xlu1 %317  ;;  %v342_v30 = vmul.f32 0.0007874016, %v334_v6 }
 0x15c   : > { %v325_v19 = vmul.f32 128.0, %v243_v14  ;;  %v312_v24 = vpop.xlane.xlu0 %311  ;;  %v364_v25 = vadd.f32 %v356_v29, %v340_v8  ;;  %v350_v36 = vsub.f32 %v244_v17, %v318_v20  ;;  %v339_v33 = vmul.f32 0.0007874016, %v331_v23 }
 0x15d   : > { %v361_v26 = vadd.f32 %v353_v16, %v337_v5  ;;  %v347_v27 = vsub.f32 %v241_v4, %v312_v24 }
 0x15e   : > { %v333_v31 = vsub.f32 %v325_v19, %v615_v40  ;;  %373 = vst.msk [vmem:[%s624_s22 + $0x28] sm:$0xff] %vm367_vm8, %v364_v25  ;;  %v358_v32 = vmul.f32 0.8992126, %v350_v36 }
 0x15f   : > { %370 = vst.msk [vmem:[%s624_s22 + $0x10] sm:$0xff] %vm367_vm8, %v361_v26  ;;  %v355_v35 = vmul.f32 0.8992126, %v347_v27 }
 0x160   : > { %v316_v37 = vpop.xlane.xlu0 %315  ;;  %v366_v11 = vadd.f32 %v358_v32, %v342_v30  ;;  %v341_v18 = vmul.f32 0.0007874016, %v333_v31 }
 0x161   : > { %v363_v38 = vadd.f32 %v355_v35, %v339_v33  ;;  %v349_v39 = vsub.f32 %v243_v14, %v316_v37 }
 0x162   : > { %375 = vst.msk [vmem:[%s624_s22 + $0x38] sm:$0xff] %vm367_vm8, %v366_v11 }
 0x163   : > { %372 = vst.msk [vmem:[%s624_s22 + $0x20] sm:$0xff] %vm367_vm8, %v363_v38  ;;  %v357_v41 = vmul.f32 0.8992126, %v349_v39 }
 0x165   : > { %v365_v42 = vadd.f32 %v357_v41, %v341_v18 }
 0x167   : > { %374 = vst.msk [vmem:[%s624_s22 + $0x30] sm:$0xff] %vm367_vm8, %v365_v42 }
 0x168 PF: > { %s12_s9 = sadd.s32 1, %s495_s9  }
 0x169   : > { %p9_p4 = scmp.ge.s32.totalorder %s12_s9, 6  }
 0x16b   :  { %11 = sbr.rel (!%p9_p4) target bundleno = 1 (0x1), region = 59 }

</bundles_post_ra>
